<compile_context>
chip_gen: v7x
topology: tpu7x:2x2x1
jax: 0.10.0
libtpu: 0.0.40
codegen_flags: <defaults>
</compile_context>

<pallas_src>
import functools

import jax
import jax.numpy as jnp
from jax import lax
from jax.experimental import pallas as pl
from jax.experimental.pallas import tpu as pltpu


def _pick_kv_chunk(s, max_chunk=1024):
    """Largest divisor of s that is <= max_chunk (s itself if already small)."""
    if s <= max_chunk:
        return s
    for c in range(max_chunk, 0, -1):
        if s % c == 0:
            return c
    return s


def attention_block_kernel(x_ref, wp_ref, bp_ref, wo_ref, bo_ref, o_ref,
                           *, n_heads, d_k, scale, kv_chunk, matmul_dtype):
    """One batch element per grid step; everything kept in [C, S] layout."""

    def mm(a, b, contract):
        if matmul_dtype is not None:
            a = a.astype(matmul_dtype)
            b = b.astype(matmul_dtype)
        return lax.dot_general(a, b, (contract, ((), ())),
                               preferred_element_type=jnp.float32)

    x = x_ref[0]                                   # [C, S]
    s_len = x.shape[1]
    hdk = n_heads * d_k

    # qkv projection: [3*H*dk, S] with rows ordered [Q_all | K_all | V_all]
    qkv = mm(wp_ref[...], x, ((1,), (0,))) + bp_ref[...]

    wo = wo_ref[...]                               # [H*dk, C]

    # residual + output bias; per-head contributions accumulated below
    out = x.astype(jnp.float32) + bo_ref[...]      # [C, S]

    for h in range(n_heads):
        q = qkv[h * d_k:(h + 1) * d_k, :]                          # [dk, S]
        k = qkv[hdk + h * d_k: hdk + (h + 1) * d_k, :]             # [dk, S]
        v = qkv[2 * hdk + h * d_k: 2 * hdk + (h + 1) * d_k, :]     # [dk, S]

        res = None                                                 # [dk, S_i]
        for j0 in range(0, s_len, kv_chunk):
            kc = k[:, j0:j0 + kv_chunk]                            # [dk, cj]
            vc = v[:, j0:j0 + kv_chunk]                            # [dk, cj]

            # attn[i, j] = <q_i, k_j> * scale                      -> [S_i, cj]
            attn = mm(q, kc, ((0,), (0,))) * scale

            # softmax over the *query* axis i (dim=1 of [B, i, j, h]);
            # it is per key-column j, so key chunks are independent.
            attn = attn - jnp.max(attn, axis=0, keepdims=True)
            attn = jnp.exp(attn)
            attn = attn * pl.reciprocal(
                jnp.sum(attn, axis=0, keepdims=True), approx=True)

            # partial[d, i] = sum_j vc[d, j] * attn[i, j]
            part = mm(vc, attn, ((1,), (1,)))
            res = part if res is None else res + part

        # fold output projection into the head loop:
        # out[c, i] += sum_d wo[h*dk + d, c] * res[d, i]
        out = out + mm(wo[h * d_k:(h + 1) * d_k, :], res, ((0,), (0,)))

    o_ref[0] = out.astype(o_ref.dtype)


def attention_block(x_nchw, wp, bp, wo, bo, *, n_heads, d_k, matmul_dtype=None):
    """Forward pass of AttentionBlock.

    x_nchw: [B, C, H, W]
    wp: [C, 3*H*dk]  (= projection.weight.T; per-head interleaved q|k|v columns)
    bp: [3*H*dk]
    wo: [H*dk, C]    (= output.weight.T)
    bo: [C]
    matmul_dtype: optionally cast matmul operands (e.g. jnp.bfloat16 on v6e/v7x).
    """
    B, C, H, W = x_nchw.shape
    S = H * W
    hdk = n_heads * d_k
    n3 = 3 * hdk
    scale = float(d_k) ** -0.5
    kv_chunk = _pick_kv_chunk(S)

    # Native [B, C, S] layout: spatial positions on the lane axis, no transpose.
    x = x_nchw.reshape(B, C, S)

    # Reorder projection weight/bias so the kernel sees contiguous
    # [Q_allheads | K_allheads | V_allheads] row blocks, stored as [3*H*dk, C]
    # so that qkv = wp_r @ x contracts directly over C.
    wp_r = jnp.transpose(wp.reshape(C, n_heads, 3, d_k),
                         (2, 1, 3, 0)).reshape(n3, C)
    bp_r = jnp.transpose(bp.reshape(n_heads, 3, d_k),
                         (1, 0, 2)).reshape(n3, 1)
    bo_r = bo.reshape(C, 1)

    kernel = functools.partial(
        attention_block_kernel, n_heads=n_heads, d_k=d_k, scale=scale,
        kv_chunk=kv_chunk, matmul_dtype=matmul_dtype)

    # Explicit VMEM budget: double-buffered x/out tiles + weights + scratch.
    itemsize = 4
    est = 2 * 2 * C * S * itemsize                             # x, out tiles (2x buffered)
    est += 2 * (n3 * C + n3 + hdk * C + C) * itemsize          # weights / biases
    est += (n3 * S + S * kv_chunk + d_k * S + C * S) * itemsize  # qkv, attn, res, acc
    vmem_limit = int(min(max(4 * est, 32 * 1024 * 1024), 96 * 1024 * 1024))

    out = pl.pallas_call(
        kernel,
        out_shape=jax.ShapeDtypeStruct((B, C, S), x.dtype),
        grid_spec=pltpu.PrefetchScalarGridSpec(
            num_scalar_prefetch=0,
            grid=(B,),
            in_specs=[
                pl.BlockSpec((1, C, S), lambda b: (b, 0, 0)),   # x, per-batch tile
                pl.BlockSpec((n3, C), lambda b: (0, 0)),        # qkv weight (reordered)
                pl.BlockSpec((n3, 1), lambda b: (0, 0)),        # qkv bias   (reordered)
                pl.BlockSpec((hdk, C), lambda b: (0, 0)),       # output weight^T
                pl.BlockSpec((C, 1), lambda b: (0, 0)),         # output bias
            ],
            out_specs=pl.BlockSpec((1, C, S), lambda b: (b, 0, 0)),
        ),
        compiler_params=pltpu.CompilerParams(
            dimension_semantics=("parallel",),
            vmem_limit_bytes=vmem_limit),
    )(x, wp_r, bp_r, wo, bo_r)

    # TODO(synk): on v7x with B == 1, add a second parallel grid axis (heads or
    # spatial tiles) so both TensorCores get work.
    return out.reshape(B, C, H, W)


def _reference(x_nchw, wp, bp, wo, bo, *, n_heads, d_k):
    B, C, H, W = x_nchw.shape
    S = H * W
    xr = x_nchw.reshape(B, C, S).transpose(0, 2, 1)             # [B, S, C]
    qkv = (xr @ wp + bp).reshape(B, S, n_heads, 3 * d_k)
    q, k, v = jnp.split(qkv, 3, axis=-1)
    attn = jnp.einsum('bihd,bjhd->bijh', q, k) * (float(d_k) ** -0.5)
    attn = jax.nn.softmax(attn, axis=1)                         # dim=1 as in PyTorch
    res = jnp.einsum('bijh,bjhd->bihd', attn, v).reshape(B, S, n_heads * d_k)
    res = res @ wo + bo + xr
    return res.transpose(0, 2, 1).reshape(B, C, H, W)


if __name__ == "__main__":
    B, C, H, W = 2, 32, 8, 8
    n_heads, d_k = 2, 16

    key = jax.random.PRNGKey(0)
    k1, k2, k3, k4, k5 = jax.random.split(key, 5)
    x = jax.random.normal(k1, (B, C, H, W), dtype=jnp.float32)
    # deterministic synthetic parameters (Linear weights stored transposed)
    wp = jax.random.normal(k2, (C, 3 * n_heads * d_k), dtype=jnp.float32) * 0.05
    bp = jax.random.normal(k3, (3 * n_heads * d_k,), dtype=jnp.float32) * 0.05
    wo = jax.random.normal(k4, (n_heads * d_k, C), dtype=jnp.float32) * 0.05
    bo = jax.random.normal(k5, (C,), dtype=jnp.float32) * 0.05

    out = attention_block(x, wp, bp, wo, bo, n_heads=n_heads, d_k=d_k)
    jax.block_until_ready(out)

    ref = _reference(x, wp, bp, wo, bo, n_heads=n_heads, d_k=d_k)
    assert out.shape == (B, C, H, W)
    # tolerance loosened slightly for the approx EUP reciprocal in the softmax
    assert jnp.allclose(out, ref, atol=2e-3, rtol=2e-3), "mismatch vs reference"

    print("KERNEL_OK")
</pallas_src>

<mosaic_0001>
module attributes {stable_mosaic.version = 11 : i64} {
  func.func @attention_block_kernel(%arg0: i32, %arg1: memref<1x32x64xf32, #tpu.memory_space<vmem>>, %arg2: memref<96x32xf32, #tpu.memory_space<vmem>>, %arg3: memref<96x1xf32, #tpu.memory_space<vmem>>, %arg4: memref<32x32xf32, #tpu.memory_space<vmem>>, %arg5: memref<32x1xf32, #tpu.memory_space<vmem>>, %arg6: memref<1x32x64xf32, #tpu.memory_space<vmem>>) attributes {dimension_semantics = [#tpu.dimension_semantics<parallel>], iteration_bounds = array<i64: 2>, scalar_prefetch = 0 : i64, scratch_operands = 0 : i64, tpu.core_type = #tpu.core_type<tc>, window_params = [{transform_indices = @transform_0, window_bounds = array<i64: 1, 32, 64>}, {pipeline_mode = #tpu.pipeline_mode<synchronous>, transform_indices = @transform_1, window_bounds = array<i64: 96, 32>}, {pipeline_mode = #tpu.pipeline_mode<synchronous>, transform_indices = @transform_2, window_bounds = array<i64: 96, 1>}, {pipeline_mode = #tpu.pipeline_mode<synchronous>, transform_indices = @transform_3, window_bounds = array<i64: 32, 32>}, {pipeline_mode = #tpu.pipeline_mode<synchronous>, transform_indices = @transform_4, window_bounds = array<i64: 32, 1>}, {transform_indices = @transform_5, window_bounds = array<i64: 1, 32, 64>}]} {
    %c0 = arith.constant 0 : index
    %c0_0 = arith.constant 0 : index
    %c0_1 = arith.constant 0 : index
    %0 = vector.load %arg1[%c0, %c0_0, %c0_1] : memref<1x32x64xf32, #tpu.memory_space<vmem>>, vector<1x32x64xf32>
    %1 = vector.shape_cast %0 : vector<1x32x64xf32> to vector<32x64xf32>
    %c0_2 = arith.constant 0 : index
    %c0_3 = arith.constant 0 : index
    %2 = vector.load %arg2[%c0_2, %c0_3] : memref<96x32xf32, #tpu.memory_space<vmem>>, vector<96x32xf32>
    %cst = arith.constant dense<0.000000e+00> : vector<96x64xf32>
    %3 = tpu.matmul %2, %1, %cst {dimension_numbers = #tpu.dot_dimension_numbers<[1], [0], [0], [1], [0, 0, 1, 1], [], []>} : vector<96x32xf32>, vector<32x64xf32>, vector<96x64xf32> -> vector<96x64xf32>
    %c0_4 = arith.constant 0 : index
    %c0_5 = arith.constant 0 : index
    %4 = vector.load %arg3[%c0_4, %c0_5] : memref<96x1xf32, #tpu.memory_space<vmem>>, vector<96x1xf32>
    %5 = vector.broadcast %4 : vector<96x1xf32> to vector<96x64xf32>
    %6 = arith.addf %3, %5 : vector<96x64xf32>
    %c0_6 = arith.constant 0 : index
    %c0_7 = arith.constant 0 : index
    %7 = vector.load %arg4[%c0_6, %c0_7] : memref<32x32xf32, #tpu.memory_space<vmem>>, vector<32x32xf32>
    %c0_8 = arith.constant 0 : index
    %c0_9 = arith.constant 0 : index
    %8 = vector.load %arg5[%c0_8, %c0_9] : memref<32x1xf32, #tpu.memory_space<vmem>>, vector<32x1xf32>
    %9 = vector.broadcast %8 : vector<32x1xf32> to vector<32x64xf32>
    %10 = arith.addf %1, %9 : vector<32x64xf32>
    %11 = vector.extract_strided_slice %6 {offsets = [0, 0], sizes = [16, 64], strides = [1, 1]} : vector<96x64xf32> to vector<16x64xf32>
    %12 = vector.extract_strided_slice %6 {offsets = [32, 0], sizes = [16, 64], strides = [1, 1]} : vector<96x64xf32> to vector<16x64xf32>
    %13 = vector.extract_strided_slice %6 {offsets = [64, 0], sizes = [16, 64], strides = [1, 1]} : vector<96x64xf32> to vector<16x64xf32>
    %cst_10 = arith.constant dense<0.000000e+00> : vector<64x64xf32>
    %14 = tpu.matmul %11, %12, %cst_10 {dimension_numbers = #tpu.dot_dimension_numbers<[0], [0], [1], [1], [0, 1, 1, 1], [], []>} : vector<16x64xf32>, vector<16x64xf32>, vector<64x64xf32> -> vector<64x64xf32>
    %cst_11 = arith.constant 2.500000e-01 : f32
    %15 = vector.broadcast %cst_11 : f32 to vector<64x64xf32>
    %16 = arith.mulf %14, %15 : vector<64x64xf32>
    %cst_12 = arith.constant dense<0xFF800000> : vector<64xf32>
    %17 = vector.multi_reduction <maximumf>, %16, %cst_12 [0] : vector<64x64xf32> to vector<64xf32>
    %18 = vector.shape_cast %17 : vector<64xf32> to vector<1x64xf32>
    %19 = vector.broadcast %18 : vector<1x64xf32> to vector<64x64xf32>
    %20 = arith.subf %16, %19 : vector<64x64xf32>
    %21 = math.exp %20 : vector<64x64xf32>
    %cst_13 = arith.constant dense<0.000000e+00> : vector<64xf32>
    %22 = vector.multi_reduction <add>, %21, %cst_13 [0] : vector<64x64xf32> to vector<64xf32>
    %23 = vector.shape_cast %22 : vector<64xf32> to vector<1x64xf32>
    %24 = tpu.reciprocal %23 {approx = true} : vector<1x64xf32> -> vector<1x64xf32>
    %25 = vector.broadcast %24 : vector<1x64xf32> to vector<64x64xf32>
    %26 = arith.mulf %21, %25 : vector<64x64xf32>
    %cst_14 = arith.constant dense<0.000000e+00> : vector<16x64xf32>
    %27 = tpu.matmul %13, %26, %cst_14 {dimension_numbers = #tpu.dot_dimension_numbers<[1], [1], [0], [0], [0, 0, 1, 0], [], []>} : vector<16x64xf32>, vector<64x64xf32>, vector<16x64xf32> -> vector<16x64xf32>
    %28 = vector.extract_strided_slice %7 {offsets = [0, 0], sizes = [16, 32], strides = [1, 1]} : vector<32x32xf32> to vector<16x32xf32>
    %cst_15 = arith.constant dense<0.000000e+00> : vector<32x64xf32>
    %29 = tpu.matmul %28, %27, %cst_15 {dimension_numbers = #tpu.dot_dimension_numbers<[0], [0], [1], [1], [0, 1, 1, 1], [], []>} : vector<16x32xf32>, vector<16x64xf32>, vector<32x64xf32> -> vector<32x64xf32>
    %30 = arith.addf %10, %29 : vector<32x64xf32>
    %31 = vector.extract_strided_slice %6 {offsets = [16, 0], sizes = [16, 64], strides = [1, 1]} : vector<96x64xf32> to vector<16x64xf32>
    %32 = vector.extract_strided_slice %6 {offsets = [48, 0], sizes = [16, 64], strides = [1, 1]} : vector<96x64xf32> to vector<16x64xf32>
    %33 = vector.extract_strided_slice %6 {offsets = [80, 0], sizes = [16, 64], strides = [1, 1]} : vector<96x64xf32> to vector<16x64xf32>
    %cst_16 = arith.constant dense<0.000000e+00> : vector<64x64xf32>
    %34 = tpu.matmul %31, %32, %cst_16 {dimension_numbers = #tpu.dot_dimension_numbers<[0], [0], [1], [1], [0, 1, 1, 1], [], []>} : vector<16x64xf32>, vector<16x64xf32>, vector<64x64xf32> -> vector<64x64xf32>
    %cst_17 = arith.constant 2.500000e-01 : f32
    %35 = vector.broadcast %cst_17 : f32 to vector<64x64xf32>
    %36 = arith.mulf %34, %35 : vector<64x64xf32>
    %cst_18 = arith.constant dense<0xFF800000> : vector<64xf32>
    %37 = vector.multi_reduction <maximumf>, %36, %cst_18 [0] : vector<64x64xf32> to vector<64xf32>
    %38 = vector.shape_cast %37 : vector<64xf32> to vector<1x64xf32>
    %39 = vector.broadcast %38 : vector<1x64xf32> to vector<64x64xf32>
    %40 = arith.subf %36, %39 : vector<64x64xf32>
    %41 = math.exp %40 : vector<64x64xf32>
    %cst_19 = arith.constant dense<0.000000e+00> : vector<64xf32>
    %42 = vector.multi_reduction <add>, %41, %cst_19 [0] : vector<64x64xf32> to vector<64xf32>
    %43 = vector.shape_cast %42 : vector<64xf32> to vector<1x64xf32>
    %44 = tpu.reciprocal %43 {approx = true} : vector<1x64xf32> -> vector<1x64xf32>
    %45 = vector.broadcast %44 : vector<1x64xf32> to vector<64x64xf32>
    %46 = arith.mulf %41, %45 : vector<64x64xf32>
    %cst_20 = arith.constant dense<0.000000e+00> : vector<16x64xf32>
    %47 = tpu.matmul %33, %46, %cst_20 {dimension_numbers = #tpu.dot_dimension_numbers<[1], [1], [0], [0], [0, 0, 1, 0], [], []>} : vector<16x64xf32>, vector<64x64xf32>, vector<16x64xf32> -> vector<16x64xf32>
    %48 = vector.extract_strided_slice %7 {offsets = [16, 0], sizes = [16, 32], strides = [1, 1]} : vector<32x32xf32> to vector<16x32xf32>
    %cst_21 = arith.constant dense<0.000000e+00> : vector<32x64xf32>
    %49 = tpu.matmul %48, %47, %cst_21 {dimension_numbers = #tpu.dot_dimension_numbers<[0], [0], [1], [1], [0, 1, 1, 1], [], []>} : vector<16x32xf32>, vector<16x64xf32>, vector<32x64xf32> -> vector<32x64xf32>
    %50 = arith.addf %30, %49 : vector<32x64xf32>
    %c0_22 = arith.constant 0 : index
    %c0_23 = arith.constant 0 : index
    %c0_24 = arith.constant 0 : index
    %51 = vector.load %arg6[%c0_22, %c0_23, %c0_24] : memref<1x32x64xf32, #tpu.memory_space<vmem>>, vector<1x32x64xf32>
    %52 = vector.shape_cast %51 : vector<1x32x64xf32> to vector<32x64xf32>
    %53 = vector.shape_cast %50 : vector<32x64xf32> to vector<1x32x64xf32>
    tpu.vector_store %arg6[%c0_22, %c0_23, %c0_24], %53 {strides = array<i32>} : memref<1x32x64xf32, #tpu.memory_space<vmem>>, vector<1x32x64xf32>,
    return
  }
  func.func @transform_0(%arg0: i32) -> (i32, i32, i32) {
    %c0_i32 = arith.constant 0 : i32
    %c0_i32_0 = arith.constant 0 : i32
    %c0_i32_1 = arith.constant 0 : i32
    return %arg0, %c0_i32, %c0_i32_0 : i32, i32, i32
  }
  func.func @transform_1(%arg0: i32) -> (i32, i32) {
    %c0_i32 = arith.constant 0 : i32
    %c0_i32_0 = arith.constant 0 : i32
    %c0_i32_1 = arith.constant 0 : i32
    return %c0_i32, %c0_i32_0 : i32, i32
  }
  func.func @transform_2(%arg0: i32) -> (i32, i32) {
    %c0_i32 = arith.constant 0 : i32
    %c0_i32_0 = arith.constant 0 : i32
    %c0_i32_1 = arith.constant 0 : i32
    return %c0_i32, %c0_i32_0 : i32, i32
  }
  func.func @transform_3(%arg0: i32) -> (i32, i32) {
    %c0_i32 = arith.constant 0 : i32
    %c0_i32_0 = arith.constant 0 : i32
    %c0_i32_1 = arith.constant 0 : i32
    return %c0_i32, %c0_i32_0 : i32, i32
  }
  func.func @transform_4(%arg0: i32) -> (i32, i32) {
    %c0_i32 = arith.constant 0 : i32
    %c0_i32_0 = arith.constant 0 : i32
    %c0_i32_1 = arith.constant 0 : i32
    return %c0_i32, %c0_i32_0 : i32, i32
  }
  func.func @transform_5(%arg0: i32) -> (i32, i32, i32) {
    %c0_i32 = arith.constant 0 : i32
    %c0_i32_0 = arith.constant 0 : i32
    %c0_i32_1 = arith.constant 0 : i32
    return %arg0, %c0_i32, %c0_i32_0 : i32, i32, i32
  }
}

</mosaic_0001>

<bundles_post_ra>
// kernel: tpu_custom_call.1
= control target key start
LH: loop header
LB: loop body
LE: loop exit
PB: predicated region body
PF: predicated region fallthrough
CT: control target
= control target key end

     0   :  { %10 = vsyncpa [#allocation3], 0  ;;  %s2412_s0 = inlined_call_operand.vmem [shape: f32[2,32,64], index: 0, kind: input, shape index: {}]   ;;  %s2413_s1 = inlined_call_operand.vmem [shape: f32[96,32], index: 1, kind: input, shape index: {}]   ;;  %s2414_s2 = inlined_call_operand.vmem [shape: f32[96,1], index: 2, kind: input, shape index: {}]   ;;  %s2415_s3 = inlined_call_operand.vmem [shape: f32[32,32], index: 3, kind: input, shape index: {}]   ;;  %s2416_s4 = inlined_call_operand.vmem [shape: f32[32,1], index: 4, kind: input, shape index: {}]   ;;  %s2417_s5 = inlined_call_operand.hbm [shape: f32[2,32,64], index: 5, kind: output, shape index: {}]  }
   0x1   :  { %12 = vsyncpa [#allocation3 + $0x1], 0  ;;  %s2064_s18 = smov 0   ;;  %s2066_s19 = smov 0  }
   0x2   :  { %s2068_s20 = smov 0   ;;  %s2070_s21 = smov 0  }
   0x3 LB: > { %s2085_s22 = sadd.s32 4294967295, %s2028_s21   ;;  %s1551_s23 = sadd.s32 4294967294, %s2028_s21   ;;  %s2028_s21 = sphi %s2070_s21, %s2425_s21   ;;  %s2024_s20 = sphi %s2068_s20, %s2424_s20   ;;  %s2020_s19 = sphi %s2066_s19, %s2423_s19   ;;  %s2016_s18 = sphi %s2064_s18, %s2422_s18  }
   0x4   : > { %s2089_s24 = sadd.s32 1, %s2028_s21   ;;  %s135_s25 = sadd.s32 1, %s2024_s20 }
   0x5   : > { %s132_s26 = ssub.s32 %s2028_s21, %s2089_s24  ;;  %p145_p0 = scmp.ne.s32.totalorder %s2024_s20, %s2020_s19 }
   0x6   : > { %p133_p1 = scmp.eq.s32.totalorder %s132_s26, 0  ;;  %p146_p2 = scmp.eq.s32.totalorder %s2085_s22, 1 }
   0x7   : > { %p151_p3 = scmp.ne.s32.totalorder %s2020_s19, %s2016_s18  ;;  %p152_p4 = scmp.eq.s32.totalorder %s1551_s23, 1 }
   0x8   : > { %s2100_s27 = scalar_select %p133_p1, %s2024_s20, %s135_s25  }
   0x9   : > { %p2102_p5 = por %p146_p2, %p145_p0  ;;  %p2106_p6 = por %p152_p4, %p151_p3 }
   0xa   : > { %p1554_p7 = scmp.ge.s32.totalorder %s2028_s21, 1  ;;  %p190_p8 = scmp.lt.s32.totalorder %s2028_s21, 3 }
   0xc   : > { %p191_p9 = pnand %p1554_p7, %p190_p8 }
   0xd   : > { %p218_p10 = scmp.lt.s32.totalorder (!%p191_p9), %s2085_s22, 1  ;;  %v227_v0 = vld [vmem:[%s2413_s1] sm:$0xff] (!%p191_p9)  ;;  %vm311_vm0 = vcmask (!%p191_p9), 261120   ;;  %v2030_v1 = vmov (!%p191_p9), 0   ;;  %v240_v4 = vld [vmem:[%s2414_s2 + $0x8] sm:$0xff] (!%p191_p9)  ;;  %v229_v15 = vld [vmem:[%s2413_s1 + $0x10] sm:$0xff] (!%p191_p9) }
   0xe   : > { %194 = sbr.rel (%p191_p9) target bundleno = 1748 (0x6d4), region = 40  ;;  %1697 = vmatprep.mubr.msk.f32.mxu0 (!%p191_p9), %vm311_vm0, %v227_v0  ;;  %1928 = vset.pattern.permute.xlu0 (!%p191_p9), %v2030_v1  ;;  %v239_v2 = vld [vmem:[%s2414_s2] sm:$0xff] (!%p191_p9)  ;;  %v244_v5 = vld [vmem:[%s2414_s2 + $0x28] sm:$0xff] (!%p191_p9)  ;;  %v241_v16 = vld [vmem:[%s2414_s2 + $0x10] sm:$0xff] (!%p191_p9)  ;;  %vm537_vm1 = vcmask (!%p191_p9), 130048   ;;  %vm675_vm2 = vcmask (!%p191_p9), 523264  }
   0xf   : > { %253 = vperm.xlu0 (!%p191_p9), %1928, %v239_v2   ;;  %1929 = vset.pattern.permute.xlu1 (!%p191_p9), %v2030_v1  ;;  %v243_v3 = vld [vmem:[%s2414_s2 + $0x20] sm:$0xff] (!%p191_p9)  ;;  %v248_v13 = vld [vmem:[%s2414_s2 + $0x48] sm:$0xff] (!%p191_p9)  ;;  %v230_v17 = vld [vmem:[%s2413_s1 + $0x18] sm:$0xff] (!%p191_p9)  ;;  %s215_s10 = sand.u32 (!%p191_p9), 1, %s2020_s19  }
  0x10   : > { %273 = vperm.xlu1 (!%p191_p9), %1929, %v243_v3   ;;  %v247_v12 = vld [vmem:[%s2414_s2 + $0x40] sm:$0xff] (!%p191_p9)  ;;  %v228_v14 = vld [vmem:[%s2413_s1 + $0x8] sm:$0xff] (!%p191_p9)  ;;  %v242_v19 = vld [vmem:[%s2414_s2 + $0x18] sm:$0xff] (!%p191_p9)  ;;  %s1555_s11 = sshll.u32 (!%p191_p9), %s215_s10, 5 }
  0x11   : > { %v231_v18 = vld [vmem:[%s2413_s1 + $0x20] sm:$0xff] (!%p191_p9)  ;;  %v232_v20 = vld [vmem:[%s2413_s1 + $0x28] sm:$0xff] (!%p191_p9)  ;;  %v233_v21 = vld [vmem:[%s2413_s1 + $0x30] sm:$0xff] (!%p191_p9)  ;;  %s217_s12 = scalar_lea.vmem (!%p191_p9), [#allocation2], %s1555_s11 }
  0x12   : > { %v245_v22 = vld [vmem:[%s2414_s2 + $0x30] sm:$0xff] (!%p191_p9)  ;;  %v234_v23 = vld [vmem:[%s2413_s1 + $0x38] sm:$0xff] (!%p191_p9)  ;;  %v235_v24 = vld [vmem:[%s2413_s1 + $0x40] sm:$0xff] (!%p191_p9)  ;;  %s1489_s13 = sshll.u32 (!%p191_p9), %s217_s12, 4  ;;  %s2362_s13 = int_to_ptr.vmem [resolvable:$true] %s1489_s13 }
  0x13   : > { %258 = vperm.xlu0 (!%p191_p9), %1928, %v240_v4   ;;  %v246_v25 = vld [vmem:[%s2414_s2 + $0x38] sm:$0xff] (!%p191_p9)  ;;  %v236_v26 = vld [vmem:[%s2413_s1 + $0x48] sm:$0xff] (!%p191_p9)  ;;  %v237_v27 = vld [vmem:[%s2413_s1 + $0x50] sm:$0xff] (!%p191_p9)  ;;  %s1966_s23 = scalar_lea.vmem (!%p191_p9), %s2362_s13, 512 }
  0x14   : > { %278 = vperm.xlu1 (!%p191_p9), %1929, %v244_v5   ;;  %v238_v28 = vld [vmem:[%s2413_s1 + $0x58] sm:$0xff] (!%p191_p9)  ;;  %v473_v29 = vld [vmem:[%s2415_s3] sm:$0xff] (!%p191_p9)  ;;  %v474_v30 = vld [vmem:[%s2415_s3 + $0x8] sm:$0xff] (!%p191_p9)  ;;  %p1967_p11 = scmp.ne.s32.totalorder (!%p191_p9), %s2362_s13, %s1966_s23 }
  0x15   : > { %s219_s9 = scalar_select %p218_p10, %s2085_s22, 1  ;;  %v250_v31 = vld [vmem:[%s2414_s2 + $0x58] sm:$0xff]  ;;  %v249_v1 = vld [vmem:[%s2414_s2 + $0x50] sm:$0xff]  ;;  %v477_v2 = vld [vmem:[%s2416_s4] sm:$0xff] }
  0x16   : > { %v478_v3 = vld [vmem:[%s2416_s4 + $0x8] sm:$0xff]  ;;  %v479_v4 = vld [vmem:[%s2416_s4 + $0x10] sm:$0xff]  ;;  %v480_v5 = vld [vmem:[%s2416_s4 + $0x18] sm:$0xff]  ;;  %p1968_p12 = pnand %p1967_p11, %p2102_p5 }
  0x17   : > { %s1619_s14 = sshll.u32 %s219_s9, 5  ;;  %vm2272_vm3 = vmpackc.low %vm675_vm2, %vm675_vm2 }
  0x18   : > { %s222_s25 = scalar_lea.vmem %s2412_s0, %s1619_s14  ;;  %293 = vperm.xlu1 %1929, %v247_v12   ;;  %s1620_s14 = sshll.u32 %s2085_s22, 9 }
  0x19   : > { %v2133_v6 = vld [vmem:[%s222_s25] sm:$0xff]  ;;  %v2135_v7 = vld [vmem:[%s222_s25 + $0x8] sm:$0xff]  ;;  %v2137_v8 = vld [vmem:[%s222_s25 + $0x10] sm:$0xff]  ;;  %s2367_s17 = scalar_lea.hbm %s2417_s5, %s1620_s14  ;;  %s2371_s22 = scalar_lea.sflag [#allocation3], %s215_s10 }
  0x1a   : > { %v1805_v9 = vpack.c.bf16 %v2135_v7, %v2133_v6  ;;  %v2141_v10 = vld [vmem:[%s222_s25 + $0x18] sm:$0xff]  ;;  %p1969_p13 = pneg %p1968_p12  ;;  %s2031_s25 = smov [#allocation2]  }
  0x1b   : > { %v1809_v11 = vpack.c.bf16 %v2141_v10, %v2137_v8  ;;  %s1970_s26 = sshll.u32 %s2031_s25, 4  ;;  %s1971_s26 = int_to_ptr.vmem [resolvable:$false] %s1970_s26 }
  0x1c   : > { %1806 = vmatprep.subr.bf16.mxu0 %v1805_v9  ;;  %298 = vperm.xlu1 %1929, %v248_v13   ;;  %s1972_s30 = scalar_lea.vmem %s1971_s26, 1024  ;;  %p1973_p0 = scmp.lt.s32.totalorder %s2362_s13, %s1971_s26 }
  0x1d   : > { %1808 = vmatpush3.bf16.msra.mxu0 %v1805_v9  ;;  %p1974_p1 = scmp.lt.s32.totalorder %s1972_s30, %s1966_s23 }
  0x1e   : > { %1810 = vmatprep.subr.bf16.mxu0 %v1809_v11 }
  0x1f   : > { %p1975_p2 = por %p1974_p1, %p1973_p0 }
  0x20   : > { %263 = vperm.xlu1 %1929, %v241_v16  }
  0x21   : > { %1812 = vmatpush3.bf16.msra.mxu0 %v1809_v11  ;;  %p1976_p3 = pnand %p1975_p2, %p1969_p13 }
  0x24   : > { %1698 = vmatmul.mubr.msk.f32.vlgmr.msra.gmra.mrb[0].mxu0 %vm311_vm0, %v228_v14  ;;  %268 = vperm.xlu1 %1929, %v242_v19  }
  0x25   : > { %1700 = vmatprep.mubr.msk.f32.mxu0 %vm311_vm0, %v229_v15 }
  0x28   : > { %1701 = vmatmul.mubr.msk.f32.gmra.mrb[2].mxu0 %vm311_vm0, %v230_v17  ;;  %283 = vperm.xlu1 %1929, %v245_v22  }
  0x29   : > { %1703 = vmatprep.mubr.msk.f32.mxu0 %vm311_vm0, %v231_v18 }
  0x2c   : > { %1704 = vmatmul.mubr.msk.f32.gmra.mrb[4].mxu0 %vm311_vm0, %v232_v20  ;;  %288 = vperm.xlu1 %1929, %v246_v25  }
  0x2d   : > { %1706 = vmatprep.mubr.msk.f32.mxu0 %vm311_vm0, %v233_v21 }
  0x30   : > { %1707 = vmatmul.mubr.msk.f32.gmra.mrb[6].mxu0 %vm311_vm0, %v234_v23 }
  0x31   : > { %1709 = vmatprep.mubr.msk.f32.mxu0 %vm311_vm0, %v235_v24 }
  0x34   : > { %1710 = vmatmul.mubr.msk.f32.gmra.mrb[8].mxu0 %vm311_vm0, %v236_v26 }
  0x35   : > { %1712 = vmatprep.mubr.msk.f32.mxu0 %vm311_vm0, %v237_v27 }
  0x38   : > { %1713 = vmatmul.mubr.msk.f32.gmra.mrb[10].mxu0 %vm311_vm0, %v238_v28 }
  0x55   : > { %856 = vxpose.xlu1.b32.start [1/2] (short) (narrow) %v473_v29, 32 }
  0x59   : > { %857 = vxpose.xlu1.b32.end [2/2] (short) (narrow) %v474_v30, 32 }
  0x7f   : > { %308 = vperm.xlu1 %1929, %v250_v31  }
  0x8e   : > { %v254_v39 = vpop.permute.xlu0 %253 }
  0x8f   : > { %v274_v32 = vpop.permute.xlu1 %273 }
  0x92   : > { %v259_v44 = vpop.permute.xlu0 %258 }
  0x93   : > { %v279_v33 = vpop.permute.xlu1 %278 }
  0x97   : > { %v2216_v34 = vpop.permute.xlu1 %293 }
  0x9b   : > { %v2218_v35 = vpop.permute.xlu1 %298 }
  0x9f   : > { %v264_v36 = vpop.permute.xlu1 %263 }
  0xa3   : > { %v269_v37 = vpop.permute.xlu1 %268 }
  0xa7   : > { %v284_v38 = vpop.permute.xlu1 %283 }
  0xab   : > { %v289_v40 = vpop.permute.xlu1 %288 }
  0xd5   : > { %v872_v46 = vpop.trf.xlu1 }
  0xd6   : > { %1754 = vmatprep.mubr.msk.f32.mxu0 %vm537_vm1, %v872_v46 }
  0xf7   : > { %v1699_v41 = vpop.f32.mrb[0].mxu0 }
  0xf8   : > { %v414_v42 = vpop.f32.mrb[1].mxu0  ;;  %v420_v48 = vadd.f32 %v1699_v41, %v259_v44 }
  0xf9   : > { %v415_v43 = vadd.f32 %v414_v42, %v254_v39 }
  0xfb   : > { %505 = vxpose.xlu0.b32.start [1/2] (short) (narrow) %v415_v43, 64  ;;  %v1702_v45 = vpop.f32.mrb[2].mxu0 }
  0xfc   : > { %v424_v47 = vpop.f32.mrb[3].mxu0  ;;  %v430_v63 = vadd.f32 %v1702_v45, %v269_v37 }
  0xfd   : > { %v425_v62 = vadd.f32 %v424_v47, %v264_v36 }
  0xff   : > { %506 = vxpose.xlu0.b32.end [2/2] (short) (narrow) %v420_v48, 64  ;;  %v1705_v49 = vpop.f32.mrb[4].mxu0 }
 0x100   : > { %v440_v50 = vadd.f32 %v1705_v49, %v279_v33  ;;  %v434_v51 = vpop.f32.mrb[5].mxu0 }
 0x101   : > { %v435_v52 = vadd.f32 %v434_v51, %v274_v32 }
 0x103   : > { %v1708_v53 = vpop.f32.mrb[6].mxu0  ;;  %v1813_v54 = vpack.c.bf16 %v440_v50, %v435_v52 }
 0x104   : > { %v450_v55 = vadd.f32 %v1708_v53, %v289_v40  ;;  %v444_v56 = vpop.f32.mrb[7].mxu0 }
 0x105   : > { %v445_v57 = vadd.f32 %v444_v56, %v284_v38  ;;  %1814 = vmatprep.subr.bf16.mxu1 %v1813_v54 }
 0x106   : > { %1816 = vmatpush3.bf16.msra.mxu1 %v1813_v54 }
 0x107   : > { %v2221_v58 = vpack.c.bf16 %v450_v55, %v445_v57  ;;  %v2223_v59 = vpop.f32.mrb[8].mxu0 }
 0x108   : > { %v454_v60 = vpop.f32.mrb[9].mxu0 }
 0x109   : > { %v455_v17 = vadd.f32 %v454_v60, %v2216_v34 }
 0x10b   : > { %v2225_v61 = vpop.f32.mrb[10].mxu0 }
 0x10c   : > { %v2227_v0 = vpop.f32.mrb[11].mxu0 }
 0x118   : > { %989 = vxpose.xlu0.b32.start [1/2] (short) (narrow) %v425_v62, 64 }
 0x11c   : > { %990 = vxpose.xlu0.b32.end [2/2] (short) (narrow) %v430_v63, 64 }
 0x15d   : > { %303 = vperm.xlu0 %1928, %v249_v1  }
 0x161   : > { %483 = vperm.xlu0 %1928, %v477_v2  }
 0x165   : > { %488 = vperm.xlu0 %1928, %v478_v3  }
 0x169   : > { %493 = vperm.xlu0 %1928, %v479_v4  }
 0x16d   : > { %498 = vperm.xlu0 %1928, %v480_v5  }
 0x17b   : > { %v521_v9 = vpop.trf.xlu0 }
 0x17c   : > { %1719 = vmatprep.mubr.msk.f32.mxu1 %vm537_vm1, %v521_v9 }
 0x17f   : > { %v522_v11 = vpop.trf.xlu0 }
 0x180   : > { %1720 = vmatmul.mubr.msk.f32.vlgmr.msra.gmra.mrb[0].mxu1 %vm537_vm1, %v522_v11 }
 0x183   : > { %v523_v12 = vpop.trf.xlu0 }
 0x184   : > { %1722 = vmatprep.mubr.msk.f32.mxu1 %vm537_vm1, %v523_v12 }
 0x187   : > { %v524_v13 = vpop.trf.xlu0 }
 0x188   : > { %1723 = vmatmul.mubr.msk.f32.gmra.mrb[2].mxu1 %vm537_vm1, %v524_v13 }
 0x18b   : > { %v525_v14 = vpop.trf.xlu0 }
 0x18c   : > { %1725 = vmatprep.mubr.msk.f32.mxu1 %vm537_vm1, %v525_v14 }
 0x18f   : > { %v526_v15 = vpop.trf.xlu0 }
 0x190   : > { %1726 = vmatmul.mubr.msk.f32.gmra.mrb[4].mxu1 %vm537_vm1, %v526_v15 }
 0x193   : > { %v527_v16 = vpop.trf.xlu0 }
 0x194   : > { %1728 = vmatprep.mubr.msk.f32.mxu1 %vm537_vm1, %v527_v16 }
 0x197   : > { %v528_v18 = vpop.trf.xlu0 }
 0x198   : > { %1729 = vmatmul.mubr.msk.f32.gmra.mrb[6].mxu1 %vm537_vm1, %v528_v18 }
 0x199   : > { %1747 = vmatprep.mubr.msk.f32.mxu1 %vm675_vm2, %v455_v17 }
 0x253   : > { %v1721_v19 = vpop.f32.mrb[0].mxu1 }
 0x254   : > { %v628_v20 = vpop.f32.mrb[1].mxu1  ;;  %v668_v23 = vmul.f32 0.25, %v1721_v19 }
 0x255   : > { %v667_v24 = vmul.f32 0.25, %v628_v20 }
 0x256   : > { %v677_v29 = vsel %vm675_vm2, %v668_v23, -inf }
 0x257   : > { %v676_v31 = vsel %vm675_vm2, %v667_v24, -inf }
 0x25b   : > { %v1724_v21 = vpop.f32.mrb[2].mxu1 }
 0x25c   : > { %v638_v22 = vpop.f32.mrb[3].mxu1  ;;  %v670_v36 = vmul.f32 0.25, %v1724_v21 }
 0x25d   : > { %v669_v38 = vmul.f32 0.25, %v638_v22 }
 0x25e   : > { %v679_v43 = vsel %vm675_vm2, %v670_v36, -inf }
 0x25f   : > { %v678_v45 = vsel %vm675_vm2, %v669_v38, -inf }
 0x263   : > { %v1727_v25 = vpop.f32.mrb[4].mxu1 }
 0x264   : > { %v672_v26 = vmul.f32 0.25, %v1727_v25  ;;  %v648_v27 = vpop.f32.mrb[5].mxu1 }
 0x265   : > { %v671_v28 = vmul.f32 0.25, %v648_v27 }
 0x266   : > { %v682_v30 = vsel %vm675_vm2, %v672_v26, -inf }
 0x267   : > { %v683_v32 = vmax.f32 %v677_v29, %v682_v30  ;;  %v680_v33 = vsel %vm675_vm2, %v671_v28, -inf }
 0x268   : > { %v681_v34 = vmax.f32 %v676_v31, %v680_v33 }
 0x26a   : > { %v688_v37 = vmax.f32 %v681_v34, %v683_v32 }
 0x26b   : > { %v1730_v39 = vpop.f32.mrb[6].mxu1 }
 0x26c   : > { %v674_v40 = vmul.f32 0.25, %v1730_v39  ;;  %v658_v41 = vpop.f32.mrb[7].mxu1 }
 0x26d   : > { %v673_v42 = vmul.f32 0.25, %v658_v41 }
 0x26e   : > { %v686_v44 = vsel %vm675_vm2, %v674_v40, -inf }
 0x26f   : > { %v687_v46 = vmax.f32 %v679_v43, %v686_v44  ;;  %v684_v47 = vsel %vm675_vm2, %v673_v42, -inf }
 0x270   : > { %v685_v48 = vmax.f32 %v678_v45, %v684_v47  ;;  %v1005_v45 = vpop.trf.xlu0 }
 0x272   : > { %v689_v49 = vmax.f32 %v685_v48, %v687_v46 }
 0x274   : > { %v690_v50 = vmax.f32 %v688_v37, %v689_v49  ;;  %v1006_v48 = vpop.trf.xlu0 }
 0x276   : > { %v691_v51 = vrot.slane %v690_v50, 4 }
 0x278   : > { %v692_v52 = vmax.f32 %v690_v50, %v691_v51  ;;  %v1007_v49 = vpop.trf.xlu0 }
 0x27a   : > { %v693_v53 = vrot.slane %v692_v52, 2 }
 0x27c   : > { %v694_v54 = vmax.f32 %v692_v52, %v693_v53 }
 0x27e   : > { %v695_v55 = vrot.slane %v694_v54, 1 }
 0x280   : > { %v696_v56 = vmax.f32 %v694_v54, %v695_v55 }
 0x282   : > { %v697_v57 = vsub.f32 %v667_v24, %v696_v56  ;;  %v698_v60 = vsub.f32 %v668_v23, %v696_v56  ;;  %v699_v62 = vsub.f32 %v669_v38, %v696_v56  ;;  %v700_v63 = vsub.f32 %v670_v36, %v696_v56 }
 0x283   : > { %v701_v1 = vsub.f32 %v671_v28, %v696_v56  ;;  %v702_v2 = vsub.f32 %v672_v26, %v696_v56  ;;  %v703_v3 = vsub.f32 %v673_v42, %v696_v56  ;;  %v704_v4 = vsub.f32 %v674_v40, %v696_v56 }
 0x284   : > { %v705_v5 = vmul.f32 1.442695, %v697_v57  ;;  %v707_v9 = vmul.f32 1.442695, %v698_v60  ;;  %v709_v11 = vmul.f32 1.442695, %v699_v62 }
 0x285   : > { %v711_v12 = vmul.f32 1.442695, %v700_v63  ;;  %v713_v13 = vmul.f32 1.442695, %v701_v1  ;;  %v715_v14 = vmul.f32 1.442695, %v702_v2  ;;  %v1008_v63 = vpop.trf.xlu0 }
 0x286   : > { %1930 = vpow2.f32 %v705_v5  ;;  %v717_v15 = vmul.f32 1.442695, %v703_v3  ;;  %v719_v16 = vmul.f32 1.442695, %v704_v4 }
 0x287   : > { %1932 = vpow2.f32 %v707_v9 }
 0x288   : > { %1934 = vpow2.f32 %v709_v11 }
 0x289   : > { %1936 = vpow2.f32 %v711_v12  ;;  %v1009_v5 = vpop.trf.xlu0 }
 0x28a   : > { %1938 = vpow2.f32 %v713_v13 }
 0x28b   : > { %1940 = vpow2.f32 %v715_v14  ;;  %v460_v14 = vadd.f32 %v2223_v59, %v2218_v35  ;;  %v476_v59 = vld [vmem:[%s2415_s3 + $0x18] sm:$0xff] }
 0x28c   : > { %1942 = vpow2.f32 %v717_v15 }
 0x28d   : > { %1944 = vpow2.f32 %v719_v16  ;;  %v1010_v9 = vpop.trf.xlu0  ;;  %v873_v16 = vpop.trf.xlu1 }
 0x290   : > { %v1931_v17 = vpop.eup %1930 }
 0x291   : > { %v1933_v18 = vpop.eup %1932  ;;  %v721_v19 = vsel %vm675_vm2, %v1931_v17, 0.0  ;;  %v1011_v11 = vpop.trf.xlu0 }
 0x292   : > { %v1935_v20 = vpop.eup %1934  ;;  %v722_v21 = vsel %vm675_vm2, %v1933_v18, 0.0 }
 0x293   : > { %v1937_v22 = vpop.eup %1936  ;;  %v723_v23 = vadd.f32 %v722_v21, %v721_v19  ;;  %v724_v24 = vsel %vm675_vm2, %v1935_v20, 0.0 }
 0x294   : > { %v1939_v25 = vpop.eup %1938  ;;  %v726_v27 = vsel %vm675_vm2, %v1937_v22, 0.0 }
 0x295   : > { %v725_v26 = vadd.f32 %v724_v24, %v723_v23  ;;  %v1941_v28 = vpop.eup %1940  ;;  %v728_v30 = vsel %vm675_vm2, %v1939_v25, 0.0  ;;  %v1012_v12 = vpop.trf.xlu0 }
 0x296   : > { %v1943_v31 = vpop.eup %1942  ;;  %v730_v33 = vsel %vm675_vm2, %v1941_v28, 0.0 }
 0x297   : > { %v727_v29 = vadd.f32 %v726_v27, %v725_v26  ;;  %v1945_v34 = vpop.eup %1944  ;;  %v732_v37 = vsel %vm675_vm2, %v1943_v31, 0.0 }
 0x298   : > { %v734_v39 = vsel %vm675_vm2, %v1945_v34, 0.0 }
 0x299   : > { %v729_v32 = vadd.f32 %v728_v30, %v727_v29  ;;  %v304_v13 = vpop.permute.xlu0 %303 }
 0x29a   : > { %v465_v15 = vadd.f32 %v2227_v0, %v304_v13 }
 0x29b   : > { %v731_v36 = vadd.f32 %v730_v33, %v729_v32 }
 0x29d   : > { %v733_v38 = vadd.f32 %v732_v37, %v731_v36 }
 0x29f   : > { %v735_v40 = vadd.f32 %v734_v39, %v733_v38 }
 0x2a1   : > { %v736_v41 = vrot.slane %v735_v40, 4 }
 0x2a3   : > { %v737_v42 = vadd.f32 %v736_v41, %v735_v40 }
 0x2a5   : > { %v738_v43 = vrot.slane %v737_v42, 2 }
 0x2a7   : > { %v739_v44 = vadd.f32 %v738_v43, %v737_v42 }
 0x2a9   : > { %v740_v46 = vrot.slane %v739_v44, 1 }
 0x2ab   : > { %v741_v47 = vadd.f32 %v740_v46, %v739_v44 }
 0x2ad   : > { %1946 = vrcp.f32 %v741_v47 }
 0x2b7   : > { %v1947_v50 = vpop.eup %1946 }
 0x2b8   : > { %v743_v51 = vmul.f32 %v1947_v50, %v1931_v17  ;;  %v744_v52 = vmul.f32 %v1947_v50, %v1933_v18  ;;  %v745_v53 = vmul.f32 %v1947_v50, %v1935_v20  ;;  %v746_v54 = vmul.f32 %v1947_v50, %v1937_v22  ;;  %v874_v20 = vpop.trf.xlu1 }
 0x2b9   : > { %v747_v56 = vmul.f32 %v1947_v50, %v1939_v25  ;;  %v748_v57 = vmul.f32 %v1947_v50, %v1941_v28  ;;  %v749_v60 = vmul.f32 %v1947_v50, %v1943_v31  ;;  %v750_v62 = vmul.f32 %v1947_v50, %v1945_v34 }
 0x2ba   : > { %v1817_v1 = vpack.c.bf16 %v744_v52, %v743_v51  ;;  %v1823_v2 = vpack.c.bf16 %v746_v54, %v745_v53 }
 0x2bb   : > { %v1829_v3 = vpack.c.bf16 %v748_v57, %v747_v56  ;;  %v1835_v4 = vpack.c.bf16 %v750_v62, %v749_v60 }
 0x2bc   : > { %1819 = vmatprep.subr.msk.bf16.mxu1 %vm2272_vm3, %v1817_v1  ;;  %v875_v35 = vpop.trf.xlu1 }
 0x2bd   : > { %1822 = vmatpush3.bf16.xpose.msk.msra.mxu1 %vm2272_vm3, %v1817_v1 }
 0x2be   : > { %1825 = vmatprep.subr.msk.bf16.mxu1 %vm2272_vm3, %v1823_v2 }
 0x2c5   : > { %1828 = vmatpush3.bf16.xpose.msk.msra.mxu1 %vm2272_vm3, %v1823_v2 }
 0x2c6   : > { %1831 = vmatprep.subr.msk.bf16.mxu1 %vm2272_vm3, %v1829_v3 }
 0x2cd   : > { %1834 = vmatpush3.bf16.xpose.msk.msra.mxu1 %vm2272_vm3, %v1829_v3 }
 0x2ce   : > { %1837 = vmatprep.subr.msk.bf16.mxu1 %vm2272_vm3, %v1835_v4 }
 0x2d5   : > { %1840 = vmatpush3.bf16.xpose.msk.msra.mxu1 %vm2272_vm3, %v1835_v4 }
 0x2dc   : > { %1748 = vmatmul.mubr.msk.f32.vlgmr.msra.gmra.mrb[8].mxu1 %vm675_vm2, %v460_v14 }
 0x2dd   : > { %1792 = vmatprep.mubr.msk.f32.mxu1 %vm675_vm2, %v465_v15 }
 0x3af   : > { %v1749_v17 = vpop.f32.mrb[8].mxu1 }
 0x3b0   : > { %v847_v18 = vpop.f32.mrb[9].mxu1 }
 0x3b1   : > { %v1841_v19 = vpack.c.bf16 %v1749_v17, %v847_v18 }
 0x3b3   : > { %1842 = vmatprep.subr.bf16.mxu0 %v1841_v19 }
 0x3b4   : > { %1844 = vmatpush3.bf16.msra.mxu0 %v1841_v19 }
 0x3b5   : > { %1846 = vmatprep.subr.bf16.mxu0 %v2221_v58 }
 0x3b7   : > { %1755 = vmatmul.mubr.msk.f32.vlgmr.msra.gmra.mrb[12].mxu0 %vm537_vm1, %v873_v16 }
 0x3b8   : > { %1848 = vmatpush3.bf16.msra.mxu0 %v2221_v58  ;;  %1757 = vmatprep.mubr.msk.f32.mxu0 %vm537_vm1, %v874_v20  ;;  %v475_v58 = vld [vmem:[%s2415_s3 + $0x10] sm:$0xff] }
 0x3b9   : > { %1338 = vxpose.xlu1.b32.start [1/2] (short) (narrow) %v475_v58, 32 }
 0x3bb   : > { %1758 = vmatmul.mubr.msk.f32.gmra.mrb[14].mxu0 %vm537_vm1, %v875_v35 }
 0x3bc   : > { %1764 = vmatprep.mubr.msk.f32.mxu0 %vm537_vm1, %v1005_v45 }
 0x3bd   : > { %1339 = vxpose.xlu1.b32.end [2/2] (short) (narrow) %v476_v59, 32 }
 0x3bf   : > { %1765 = vmatmul.mubr.msk.f32.vlgmr.msra.gmra.mrb[16].mxu0 %vm537_vm1, %v1006_v48 }
 0x3c0   : > { %1767 = vmatprep.mubr.msk.f32.mxu0 %vm537_vm1, %v1007_v49 }
 0x3c3   : > { %1768 = vmatmul.mubr.msk.f32.gmra.mrb[18].mxu0 %vm537_vm1, %v1008_v63 }
 0x3c4   : > { %1770 = vmatprep.mubr.msk.f32.mxu0 %vm537_vm1, %v1009_v5 }
 0x3c7   : > { %1771 = vmatmul.mubr.msk.f32.gmra.mrb[20].mxu0 %vm537_vm1, %v1010_v9 }
 0x3c8   : > { %1773 = vmatprep.mubr.msk.f32.mxu0 %vm537_vm1, %v1011_v11 }
 0x3cb   : > { %1774 = vmatmul.mubr.msk.f32.gmra.mrb[22].mxu0 %vm537_vm1, %v1012_v12 }
 0x492   : > { %v1766_v0 = vpop.f32.mrb[16].mxu0 }
 0x493   : > { %v1111_v21 = vpop.f32.mrb[17].mxu0  ;;  %v1151_v24 = vmul.f32 0.25, %v1766_v0 }
 0x494   : > { %v1150_v25 = vmul.f32 0.25, %v1111_v21 }
 0x495   : > { %v1159_v30 = vsel %vm675_vm2, %v1151_v24, -inf }
 0x496   : > { %v1769_v22 = vpop.f32.mrb[18].mxu0  ;;  %v1158_v33 = vsel %vm675_vm2, %v1150_v25, -inf }
 0x497   : > { %v1121_v23 = vpop.f32.mrb[19].mxu0  ;;  %v1153_v31 = vmul.f32 0.25, %v1769_v22 }
 0x498   : > { %v1152_v34 = vmul.f32 0.25, %v1121_v23 }
 0x499   : > { %v1161_v43 = vsel %vm675_vm2, %v1153_v31, -inf }
 0x49a   : > { %v1772_v26 = vpop.f32.mrb[20].mxu0  ;;  %v1160_v46 = vsel %vm675_vm2, %v1152_v34, -inf }
 0x49b   : > { %v1155_v27 = vmul.f32 0.25, %v1772_v26  ;;  %v1131_v28 = vpop.f32.mrb[21].mxu0 }
 0x49c   : > { %v1154_v29 = vmul.f32 0.25, %v1131_v28 }
 0x49d   : > { %v1164_v32 = vsel %vm675_vm2, %v1155_v27, -inf }
 0x49e   : > { %v1165_v36 = vmax.f32 %v1159_v30, %v1164_v32  ;;  %v1162_v37 = vsel %vm675_vm2, %v1154_v29, -inf  ;;  %v1775_v38 = vpop.f32.mrb[22].mxu0 }
 0x49f   : > { %v1163_v39 = vmax.f32 %v1158_v33, %v1162_v37  ;;  %v1157_v40 = vmul.f32 0.25, %v1775_v38  ;;  %v1141_v41 = vpop.f32.mrb[23].mxu0 }
 0x4a0   : > { %v1156_v42 = vmul.f32 0.25, %v1141_v41 }
 0x4a1   : > { %v1170_v44 = vmax.f32 %v1163_v39, %v1165_v36  ;;  %v1168_v45 = vsel %vm675_vm2, %v1157_v40, -inf }
 0x4a2   : > { %v1169_v47 = vmax.f32 %v1161_v43, %v1168_v45  ;;  %v1166_v48 = vsel %vm675_vm2, %v1156_v42, -inf }
 0x4a3   : > { %v1167_v49 = vmax.f32 %v1160_v46, %v1166_v48 }
 0x4a5   : > { %v1171_v50 = vmax.f32 %v1167_v49, %v1169_v47 }
 0x4a7   : > { %v1172_v51 = vmax.f32 %v1170_v44, %v1171_v50 }
 0x4a9   : > { %v1173_v52 = vrot.slane %v1172_v51, 4 }
 0x4ab   : > { %v1174_v53 = vmax.f32 %v1172_v51, %v1173_v52 }
 0x4ad   : > { %v1175_v54 = vrot.slane %v1174_v53, 2 }
 0x4af   : > { %v1176_v56 = vmax.f32 %v1174_v53, %v1175_v54 }
 0x4b1   : > { %v1177_v57 = vrot.slane %v1176_v56, 1 }
 0x4b3   : > { %v1178_v60 = vmax.f32 %v1176_v56, %v1177_v57 }
 0x4b5   : > { %v1179_v62 = vsub.f32 %v1150_v25, %v1178_v60  ;;  %v1180_v63 = vsub.f32 %v1151_v24, %v1178_v60  ;;  %v1181_v1 = vsub.f32 %v1152_v34, %v1178_v60  ;;  %v1182_v2 = vsub.f32 %v1153_v31, %v1178_v60 }
 0x4b6   : > { %v1183_v3 = vsub.f32 %v1154_v29, %v1178_v60  ;;  %v1184_v4 = vsub.f32 %v1155_v27, %v1178_v60  ;;  %v1185_v5 = vsub.f32 %v1156_v42, %v1178_v60  ;;  %v1186_v9 = vsub.f32 %v1157_v40, %v1178_v60 }
 0x4b7   : > { %v1187_v11 = vmul.f32 1.442695, %v1179_v62  ;;  %v1189_v12 = vmul.f32 1.442695, %v1180_v63  ;;  %v1191_v13 = vmul.f32 1.442695, %v1181_v1  ;;  %v309_v62 = vpop.permute.xlu1 %308 }
 0x4b8   : > { %v1193_v14 = vmul.f32 1.442695, %v1182_v2  ;;  %v1195_v15 = vmul.f32 1.442695, %v1183_v3  ;;  %v1197_v16 = vmul.f32 1.442695, %v1184_v4  ;;  %v470_v63 = vadd.f32 %v2225_v61, %v309_v62  ;;  %v484_v61 = vpop.permute.xlu0 %483 }
 0x4b9   : > { %1948 = vpow2.f32 %v1187_v11  ;;  %v1199_v17 = vmul.f32 1.442695, %v1185_v5  ;;  %v1201_v18 = vmul.f32 1.442695, %v1186_v9 }
 0x4ba   : > { %1950 = vpow2.f32 %v1189_v12 }
 0x4bb   : > { %1952 = vpow2.f32 %v1191_v13  ;;  %v1354_v1 = vpop.trf.xlu1 }
 0x4bc   : > { %1954 = vpow2.f32 %v1193_v14  ;;  %1799 = vmatprep.mubr.msk.f32.mxu0 %vm537_vm1, %v1354_v1  ;;  %v489_v11 = vpop.permute.xlu0 %488  ;;  %v501_v14 = vadd.f32 %v484_v61, %v2133_v6 }
 0x4bd   : > { %1956 = vpow2.f32 %v1195_v15  ;;  %v502_v13 = vadd.f32 %v489_v11, %v2135_v7 }
 0x4be   : > { %1958 = vpow2.f32 %v1197_v16 }
 0x4bf   : > { %1960 = vpow2.f32 %v1199_v17  ;;  %v1355_v2 = vpop.trf.xlu1 }
 0x4c0   : > { %1962 = vpow2.f32 %v1201_v18  ;;  %v494_v12 = vpop.permute.xlu0 %493 }
 0x4c3   : > { %v1949_v19 = vpop.eup %1948  ;;  %v1356_v9 = vpop.trf.xlu1 }
 0x4c4   : > { %v1951_v20 = vpop.eup %1950  ;;  %v1203_v35 = vsel %vm675_vm2, %v1949_v19, 0.0  ;;  %v499_v15 = vpop.permute.xlu0 %498 }
 0x4c5   : > { %v1953_v58 = vpop.eup %1952  ;;  %v1204_v59 = vsel %vm675_vm2, %v1951_v20, 0.0 }
 0x4c6   : > { %v1955_v0 = vpop.eup %1954  ;;  %v1205_v21 = vadd.f32 %v1204_v59, %v1203_v35  ;;  %v1206_v22 = vsel %vm675_vm2, %v1953_v58, 0.0  ;;  %v503_v35 = vadd.f32 %v494_v12, %v2137_v8 }
 0x4c7   : > { %v1957_v23 = vpop.eup %1956  ;;  %v1208_v25 = vsel %vm675_vm2, %v1955_v0, 0.0  ;;  %v1357_v55 = vpop.trf.xlu1 }
 0x4c8   : > { %v1207_v24 = vadd.f32 %v1206_v22, %v1205_v21  ;;  %v1959_v26 = vpop.eup %1958  ;;  %v1210_v28 = vsel %vm675_vm2, %v1957_v23, 0.0 }
 0x4c9   : > { %v1961_v29 = vpop.eup %1960  ;;  %v1212_v31 = vsel %vm675_vm2, %v1959_v26, 0.0 }
 0x4ca   : > { %v1209_v27 = vadd.f32 %v1208_v25, %v1207_v24  ;;  %v1963_v32 = vpop.eup %1962  ;;  %v1214_v34 = vsel %vm675_vm2, %v1961_v29, 0.0 }
 0x4cb   : > { %v1216_v37 = vsel %vm675_vm2, %v1963_v32, 0.0 }
 0x4cc   : > { %v1211_v30 = vadd.f32 %v1210_v28, %v1209_v27 }
 0x4ce   : > { %v1213_v33 = vadd.f32 %v1212_v31, %v1211_v30 }
 0x4d0   : > { %v1215_v36 = vadd.f32 %v1214_v34, %v1213_v33 }
 0x4d2   : > { %v1217_v38 = vadd.f32 %v1216_v37, %v1215_v36 }
 0x4d4   : > { %v1218_v39 = vrot.slane %v1217_v38, 4 }
 0x4d6   : > { %v1219_v40 = vadd.f32 %v1218_v39, %v1217_v38 }
 0x4d8   : > { %v1220_v41 = vrot.slane %v1219_v40, 2 }
 0x4da   : > { %v1221_v42 = vadd.f32 %v1220_v41, %v1219_v40 }
 0x4dc   : > { %v1222_v43 = vrot.slane %v1221_v42, 1 }
 0x4de   : > { %v1223_v44 = vadd.f32 %v1222_v43, %v1221_v42 }
 0x4e0   : > { %1964 = vrcp.f32 %v1223_v44 }
 0x4ea   : > { %v1965_v45 = vpop.eup %1964 }
 0x4eb   : > { %v1225_v46 = vmul.f32 %v1965_v45, %v1949_v19  ;;  %v1226_v47 = vmul.f32 %v1965_v45, %v1951_v20  ;;  %v1227_v48 = vmul.f32 %v1965_v45, %v1953_v58  ;;  %v1228_v49 = vmul.f32 %v1965_v45, %v1955_v0 }
 0x4ec   : > { %v1229_v50 = vmul.f32 %v1965_v45, %v1957_v23  ;;  %v1230_v51 = vmul.f32 %v1965_v45, %v1959_v26  ;;  %v1231_v52 = vmul.f32 %v1965_v45, %v1961_v29  ;;  %v1232_v53 = vmul.f32 %v1965_v45, %v1963_v32 }
 0x4ed   : > { %v1849_v54 = vpack.c.bf16 %v1226_v47, %v1225_v46  ;;  %v1855_v56 = vpack.c.bf16 %v1228_v49, %v1227_v48  ;;  %v504_v20 = vadd.f32 %v499_v15, %v2141_v10 }
 0x4ee   : > { %v1861_v57 = vpack.c.bf16 %v1230_v51, %v1229_v50  ;;  %v1867_v60 = vpack.c.bf16 %v1232_v53, %v1231_v52 }
 0x4ef   : > { %1851 = vmatprep.subr.msk.bf16.mxu1 %vm2272_vm3, %v1849_v54 }
 0x4f0   : > { %1854 = vmatpush3.bf16.xpose.msk.msra.mxu1 %vm2272_vm3, %v1849_v54 }
 0x4f1   : > { %1857 = vmatprep.subr.msk.bf16.mxu1 %vm2272_vm3, %v1855_v56 }
 0x4f8   : > { %1860 = vmatpush3.bf16.xpose.msk.msra.mxu1 %vm2272_vm3, %v1855_v56 }
 0x4f9   : > { %1863 = vmatprep.subr.msk.bf16.mxu1 %vm2272_vm3, %v1861_v57 }
 0x500   : > { %1866 = vmatpush3.bf16.xpose.msk.msra.mxu1 %vm2272_vm3, %v1861_v57 }
 0x501   : > { %1869 = vmatprep.subr.msk.bf16.mxu1 %vm2272_vm3, %v1867_v60 }
 0x508   : > { %1872 = vmatpush3.bf16.xpose.msk.msra.mxu1 %vm2272_vm3, %v1867_v60 }
 0x50f   : > { %1793 = vmatmul.mubr.msk.f32.vlgmr.msra.gmra.mrb[10].mxu1 %vm675_vm2, %v470_v63 }
 0x5e2   : > { %v1794_v3 = vpop.f32.mrb[10].mxu1 }
 0x5e3   : > { %v1329_v4 = vpop.f32.mrb[11].mxu1 }
 0x5e4   : > { %v1873_v5 = vpack.c.bf16 %v1794_v3, %v1329_v4 }
 0x5e6   : > { %1874 = vmatprep.subr.bf16.mxu0 %v1873_v5 }
 0x5e7   : > { %1876 = vmatpush3.bf16.msra.mxu0 %v1873_v5 }
 0x5ea   : > { %1800 = vmatmul.mubr.msk.f32.vlgmr.msra.gmra.mrb[12].mxu0 %vm537_vm1, %v1355_v2 }
 0x5eb   : > { %1802 = vmatprep.mubr.msk.f32.mxu0 %vm537_vm1, %v1356_v9 }
 0x5ee   : > { %1803 = vmatmul.mubr.msk.f32.gmra.mrb[14].mxu0 %vm537_vm1, %v1357_v55 }
 0x6bd   : > { %v1801_v16 = vpop.f32.mrb[12].mxu0 }
 0x6be   : > { %v1877_v17 = vadd.f32 %v1801_v16, %v502_v13  ;;  %v1448_v18 = vpop.f32.mrb[13].mxu0 }
 0x6bf   : > { %v1878_v19 = vadd.f32 %v1448_v18, %v501_v14 }
 0x6c0   : > { %1472 = vst.msk [vmem:[%s217_s12 + $0x8] sm:$0xff] %vm675_vm2, %v1877_v17 }
 0x6c1   : > { %1471 = vst.msk [vmem:[%s217_s12] sm:$0xff] %vm675_vm2, %v1878_v19  ;;  %v1804_v7 = vpop.f32.mrb[14].mxu0 }
 0x6c2   : > { %v1879_v6 = vadd.f32 %v1804_v7, %v504_v20  ;;  %v1458_v58 = vpop.f32.mrb[15].mxu0 }
 0x6c3   : > { %v1880_v59 = vadd.f32 %v1458_v58, %v503_v35 }
 0x6c4   : > { %1474 = vst.msk [vmem:[%s217_s12 + $0x18] sm:$0xff] %vm675_vm2, %v1879_v6 }
 0x6c5   : > { %1473 = vst.msk [vmem:[%s217_s12 + $0x10] sm:$0xff] %vm675_vm2, %v1880_v59 }
 0x6c6   : > { %1979 = shalt.err (!%p1976_p3)
}
 0x6c7   : > { %s1980_s6 = scalar_lea.hbm %s2367_s17, 512  ;;  %s1984_s9 = scalar_lea.hbm %s2417_s5, 1024 }
 0x6c8   : > { %p1981_p4 = scmp.ne.s32.totalorder %s2367_s17, %s1980_s6  ;;  %p1985_p9 = scmp.lt.u32.totalorder %s2367_s17, %s2417_s5 }
 0x6c9   : > { %p1986_p10 = scmp.lt.u32.totalorder %s1984_s9, %s1980_s6  ;;  %p1988_p12 = scmp.lt.u32.totalorder %s1980_s6, %s2367_s17 }
 0x6ca   : > { %p1982_p7 = pnand %p1981_p4, %p2102_p5 }
 0x6cb   : > { %p1987_p11 = por %p1986_p10, %p1985_p9 }
 0x6cc   : > { %p1983_p8 = pneg %p1982_p7 }
 0x6cd   : > { %p1989_p13 = por %p1988_p12, %p1987_p11 }
 0x6cf   : > { %p1990_p0 = pnand %p1989_p13, %p1983_p8 }
 0x6d1   : > { %1993 = shalt.err (!%p1990_p0)
}
 0x6d2   : > { %s2032_s12 = smov 128   ;;  %s2033_s14 = smov 8  }
 0x6d3   : > { %1885 = dma.vmem_to_hbm [thread:$0]  (%p2102_p5), %s2362_s13, 512, %s2367_s17, %s2371_s22, %s2032_s12, %s2032_s12, %s2033_s14  }
 0x6d4 PF: > { %p1891_p1 = scmp.ge.s32.totalorder %s2028_s21, 2  ;;  %s1504_s15 = sand.u32 1, %s2016_s18  }
 0x6d5   : > { %s1505_s16 = scalar_lea.sflag [#allocation3], %s1504_s15 }
 0x6d6   : > { %p1888_p2 = pnand %p1891_p1, %p2106_p6 }
 0x6d8   : > { %2011 = dma.done.wait (!%p1888_p2), %s1505_s16, 512  }
 0x6d9   : > { %2013 = vsyncadd (!%p1888_p2), %s1505_s16, 4294966784  ;;  %p15_p3 = scmp.ge.s32.totalorder %s2089_s24, 4   ;;  %s2422_s18 = smov %s2020_s19 }
 0x6da   : > { %s2423_s19 = smov %s2024_s20  ;;  %s2424_s20 = smov %s2100_s27 }
 0x6db   : > { %s2425_s21 = smov %s2089_s24  ;;  %17 = sbr.rel (!%p15_p3) target bundleno = 3 (0x3), region = 75 }
 0x6e2   :  { %1510 = vsyncpa [#allocation3], 1 }
 0x6e3   :  { %1512 = vsyncpa [#allocation3 + $0x1], 1 }

</bundles_post_ra>
